<compile_context>
chip_gen: v5e
topology: v5e:2x2
jax: 0.10.0
libtpu: 0.0.40
codegen_flags: <defaults>
</compile_context>

<pallas_src>
import jax
import jax.numpy as jnp
from jax import lax
from jax.experimental import pallas as pl
from jax.experimental.pallas import tpu as pltpu

_MAX_BATCH_TILE = 8  # static per-batch unroll inside the kernel; keep small


def _attention_kernel(
    t_ref,      # [TB, dim_t, 1]   bf16  (per-batch text columns)
    v_ref,      # [TB, dim_v, R]   f32   (native NCHW layout; R = W*H on lanes)
    wtT_ref,    # [2H, dim_t]      bf16
    btT_ref,    # [2H, 1]          f32
    wvT_ref,    # [2H, dim_v]      bf16
    bvT_ref,    # [2H, 1]          f32
    wo2T_ref,   # [dim_z+1, 2H]    bf16  (rows 0..dim_z-1: v_fusion; row dim_z: a_fusion logit)
    bo2T_ref,   # [dim_z+1, 1]     f32
    z_ref,      # [1, TB, dim_z]   f32
):
    TB = v_ref.shape[0]
    dim_z = wo2T_ref.shape[0] - 1

    rows = []
    for b in range(TB):  # static unroll; TB <= _MAX_BATCH_TILE
        # ---- first fusion layer, transposed world: hidden on sublanes, R on lanes ----
        ht = jnp.tanh(
            jnp.dot(wtT_ref[...], t_ref[b], preferred_element_type=jnp.float32)
            + btT_ref[...]
        )                                                      # [2H, 1]
        hv = jnp.tanh(
            jnp.dot(wvT_ref[...], v_ref[b].astype(jnp.bfloat16),
                    preferred_element_type=jnp.float32)
            + bvT_ref[...]
        )                                                      # [2H, R]
        fused = (hv * ht).astype(jnp.bfloat16)                 # [2H, R]

        # ---- second layer: values AND the attention logit in one matmul ----
        out = (
            jnp.dot(wo2T_ref[...], fused, preferred_element_type=jnp.float32)
            + bo2T_ref[...]
        )                                                      # [dim_z+1, R]
        values = out[:dim_z, :]                                # [dim_z, R]
        logits = out[dim_z:, :]                                # [1, R]   (R on lanes)

        # ---- softmax over regions (lane-dense exp + lane reduces) ----
        m = jnp.max(logits, axis=1, keepdims=True)             # [1, 1]
        e = jnp.exp(logits - m)                                # [1, R]
        s = jnp.sum(e, axis=1, keepdims=True)                  # [1, 1]
        attn = e * pl.reciprocal(s, approx=True)               # [1, R]

        # ---- weighted sum over regions: attn @ values^T (contract last dim of both) ----
        zrow = lax.dot_general(
            attn, values,
            dimension_numbers=(((1,), (1,)), ((), ())),
            preferred_element_type=jnp.float32,
        )                                                      # [1, dim_z]
        rows.append(zrow)

    z_ref[...] = (
        jnp.concatenate(rows, axis=0).reshape(1, TB, dim_z).astype(z_ref.dtype)
    )


def _pick_batch_tile(B, max_tb=_MAX_BATCH_TILE):
    """Largest tile dividing B; prefer an even step count (v7x has 2 TensorCores)."""
    best = None
    for tb in range(min(B, max_tb), 0, -1):
        if B % tb:
            continue
        if best is None:
            best = tb
        if (B // tb) % 2 == 0:
            return tb
    return best


def attention_forward(t, v_nchw, params, *, batch_tile=None):
    """t: [B, dim_t] f32, v_nchw: [B, dim_v, W, H] f32 -> z: [B, dim_z] f32."""
    B, dim_t = t.shape
    _, dim_v, W, H = v_nchw.shape
    R = W * H

    (wt_a, bt_a, wv_a, bv_a, wo_a, bo_a,
     wt_v, bt_v, wv_v, bv_v, wo_v, bo_v) = params
    Ha = wt_a.shape[1]
    Hv = wt_v.shape[1]
    dim_z = wo_v.shape[1]

    TB = batch_tile if batch_tile is not None else _pick_batch_tile(B)
    assert B % TB == 0, "batch tile must divide the batch"

    f32, bf16 = jnp.float32, jnp.bfloat16

    # --- pack + transpose the (tiny) weights host-side so every in-kernel matmul ---
    # --- is a standard [M,K]@[K,N] with R staying on lanes.                      ---
    wtT = jnp.concatenate([wt_a, wt_v], axis=1).T.astype(bf16)      # [2H, dim_t]
    btT = jnp.concatenate([bt_a, bt_v], axis=1).T.astype(f32)       # [2H, 1]
    wvT = jnp.concatenate([wv_a, wv_v], axis=1).T.astype(bf16)      # [2H, dim_v]
    bvT = jnp.concatenate([bv_a, bv_v], axis=1).T.astype(f32)       # [2H, 1]
    # Output projections of BOTH fusions folded into one matmul weight:
    #   rows 0..dim_z-1 -> v_fusion (zeros over the a_fusion hidden half),
    #   row  dim_z      -> a_fusion attention logit (zeros over the v_fusion half).
    wo2T = jnp.concatenate(
        [jnp.concatenate([jnp.zeros((dim_z, Ha), f32), wo_v.T], axis=1),
         jnp.concatenate([wo_a.T, jnp.zeros((1, Hv), f32)], axis=1)],
        axis=0,
    ).astype(bf16)                                                  # [dim_z+1, 2H]
    bo2T = jnp.concatenate([bo_v, bo_a], axis=1).T.astype(f32)      # [dim_z+1, 1]

    # v keeps its native [B, C, W*H] layout: a free reshape, no transpose and no cast
    # materialized in HBM.  t becomes per-batch columns (free reshape of a tiny array).
    v3 = v_nchw.reshape(B, dim_v, R)                                # [B, dim_v, R] f32
    t3 = t.reshape(B, dim_t, 1).astype(bf16)                        # [B, dim_t, 1]

    full = lambda a: pl.BlockSpec(a.shape, lambda b, _a=a: (0,) * _a.ndim)

    z = pl.pallas_call(
        _attention_kernel,
        out_shape=jax.ShapeDtypeStruct((B // TB, TB, dim_z), f32),
        grid_spec=pltpu.PrefetchScalarGridSpec(
            num_scalar_prefetch=0,
            grid=(B // TB,),
            in_specs=[
                pl.BlockSpec((TB, dim_t, 1), lambda b: (b, 0, 0)),   # t (columns)
                pl.BlockSpec((TB, dim_v, R), lambda b: (b, 0, 0)),   # v (native layout)
                full(wtT), full(btT), full(wvT), full(bvT),
                full(wo2T), full(bo2T),
            ],
            out_specs=pl.BlockSpec((1, TB, dim_z), lambda b: (b, 0, 0)),
        ),
        compiler_params=pltpu.CompilerParams(
            dimension_semantics=("parallel",),
        ),
    )(t3, v3, wtT, btT, wvT, bvT, wo2T, bo2T)

    return z.reshape(B, dim_z)


def make_params(key, dim_t, dim_v, hidden, dim_z):
    """Deterministic MLB-fusion parameters for a_fusion and v_fusion."""
    ks = jax.random.split(key, 12)
    s = 0.1
    wt_a = s * jax.random.normal(ks[0], (dim_t, hidden), jnp.float32)
    bt_a = s * jax.random.normal(ks[1], (1, hidden), jnp.float32)
    wv_a = s * jax.random.normal(ks[2], (dim_v, hidden), jnp.float32)
    bv_a = s * jax.random.normal(ks[3], (1, hidden), jnp.float32)
    wo_a = s * jax.random.normal(ks[4], (hidden, 1), jnp.float32)
    bo_a = s * jax.random.normal(ks[5], (1, 1), jnp.float32)
    wt_v = s * jax.random.normal(ks[6], (dim_t, hidden), jnp.float32)
    bt_v = s * jax.random.normal(ks[7], (1, hidden), jnp.float32)
    wv_v = s * jax.random.normal(ks[8], (dim_v, hidden), jnp.float32)
    bv_v = s * jax.random.normal(ks[9], (1, hidden), jnp.float32)
    wo_v = s * jax.random.normal(ks[10], (hidden, dim_z), jnp.float32)
    bo_v = s * jax.random.normal(ks[11], (1, dim_z), jnp.float32)
    return (wt_a, bt_a, wv_a, bv_a, wo_a, bo_a,
            wt_v, bt_v, wv_v, bv_v, wo_v, bo_v)


def attention_reference(t, v_nchw, params):
    """Pure-JAX f32 reference mirroring the PyTorch forward."""
    (wt_a, bt_a, wv_a, bv_a, wo_a, bo_a,
     wt_v, bt_v, wv_v, bv_v, wo_v, bo_v) = params
    B, C, W, H = v_nchw.shape
    R = W * H
    v = jnp.transpose(v_nchw.reshape(B, C, R), (0, 2, 1))      # [B, R, C]
    te = jnp.broadcast_to(t[:, None, :], (B, R, t.shape[1]))   # [B, R, dim_t]

    def fusion(wt, bt, wv, bv, wo, bo):
        ht = jnp.tanh(te @ wt + bt)
        hv = jnp.tanh(v @ wv + bv)
        return (ht * hv) @ wo + bo

    alpha = fusion(wt_a, bt_a, wv_a, bv_a, wo_a, bo_a)          # [B, R, 1]
    values = fusion(wt_v, bt_v, wv_v, bv_v, wo_v, bo_v)         # [B, R, dim_z]
    alpha = jax.nn.softmax(alpha, axis=1)                       # softmax over regions
    return jnp.sum(alpha * values, axis=1)                      # [B, dim_z]


if __name__ == "__main__":
    B, dim_t, dim_v, W, H = 4, 32, 4, 8, 8
    hidden, dim_z = 32, 32

    key = jax.random.PRNGKey(0)
    k_t, k_v, k_p = jax.random.split(key, 3)
    t = jax.random.normal(k_t, (B, dim_t), jnp.float32)
    v = jax.random.normal(k_v, (B, dim_v, W, H), jnp.float32)
    params = make_params(k_p, dim_t, dim_v, hidden, dim_z)

    z = attention_forward(t, v, params)
    jax.block_until_ready(z)

    z_ref = attention_reference(t, v, params)
    assert z.shape == (B, dim_z)
    # Kernel feeds bf16 operands to the MXU and uses an approximate reciprocal in
    # the softmax, so compare against the f32 reference with a loosened tolerance.
    max_err = float(jnp.max(jnp.abs(z - z_ref)))
    assert jnp.allclose(z, z_ref, atol=2e-2, rtol=2e-2), (
        f"mismatch vs JAX reference (max abs err {max_err})"
    )

    print("KERNEL_OK")
</pallas_src>

<mosaic_0001>
module attributes {stable_mosaic.version = 11 : i64} {
  func.func @_attention_kernel(%arg0: i32, %arg1: memref<2x32x1xbf16, #tpu.memory_space<vmem>>, %arg2: memref<2x4x64xf32, #tpu.memory_space<vmem>>, %arg3: memref<64x32xbf16, #tpu.memory_space<vmem>>, %arg4: memref<64x1xf32, #tpu.memory_space<vmem>>, %arg5: memref<64x4xbf16, #tpu.memory_space<vmem>>, %arg6: memref<64x1xf32, #tpu.memory_space<vmem>>, %arg7: memref<33x64xbf16, #tpu.memory_space<vmem>>, %arg8: memref<33x1xf32, #tpu.memory_space<vmem>>, %arg9: memref<1x2x32xf32, #tpu.memory_space<vmem>>) attributes {dimension_semantics = [#tpu.dimension_semantics<parallel>], iteration_bounds = array<i64: 2>, scalar_prefetch = 0 : i64, scratch_operands = 0 : i64, tpu.core_type = #tpu.core_type<tc>, window_params = [{transform_indices = @transform_0, window_bounds = array<i64: 2, 32, 1>}, {transform_indices = @transform_1, window_bounds = array<i64: 2, 4, 64>}, {pipeline_mode = #tpu.pipeline_mode<synchronous>, transform_indices = @transform_2, window_bounds = array<i64: 64, 32>}, {pipeline_mode = #tpu.pipeline_mode<synchronous>, transform_indices = @transform_3, window_bounds = array<i64: 64, 1>}, {pipeline_mode = #tpu.pipeline_mode<synchronous>, transform_indices = @transform_4, window_bounds = array<i64: 64, 4>}, {pipeline_mode = #tpu.pipeline_mode<synchronous>, transform_indices = @transform_5, window_bounds = array<i64: 64, 1>}, {pipeline_mode = #tpu.pipeline_mode<synchronous>, transform_indices = @transform_6, window_bounds = array<i64: 33, 64>}, {pipeline_mode = #tpu.pipeline_mode<synchronous>, transform_indices = @transform_7, window_bounds = array<i64: 33, 1>}, {transform_indices = @transform_8, window_bounds = array<i64: 1, 2, 32>}]} {
    %c0 = arith.constant 0 : index
    %c0_0 = arith.constant 0 : index
    %0 = vector.load %arg3[%c0, %c0_0] : memref<64x32xbf16, #tpu.memory_space<vmem>>, vector<64x32xbf16>
    %c0_1 = arith.constant 0 : index
    %c0_2 = arith.constant 0 : index
    %c0_3 = arith.constant 0 : index
    %1 = vector.load %arg1[%c0_1, %c0_2, %c0_3] : memref<2x32x1xbf16, #tpu.memory_space<vmem>>, vector<1x32x1xbf16>
    %2 = vector.shape_cast %1 : vector<1x32x1xbf16> to vector<32x1xbf16>
    %cst = arith.constant dense<0.000000e+00> : vector<64x1xf32>
    %3 = tpu.matmul %0, %2, %cst {dimension_numbers = #tpu.dot_dimension_numbers<[1], [0], [0], [1], [0, 0, 1, 1], [], []>} : vector<64x32xbf16>, vector<32x1xbf16>, vector<64x1xf32> -> vector<64x1xf32>
    %c0_4 = arith.constant 0 : index
    %c0_5 = arith.constant 0 : index
    %4 = vector.load %arg4[%c0_4, %c0_5] : memref<64x1xf32, #tpu.memory_space<vmem>>, vector<64x1xf32>
    %5 = arith.addf %3, %4 : vector<64x1xf32>
    %6 = math.tanh %5 : vector<64x1xf32>
    %c0_6 = arith.constant 0 : index
    %c0_7 = arith.constant 0 : index
    %7 = vector.load %arg5[%c0_6, %c0_7] : memref<64x4xbf16, #tpu.memory_space<vmem>>, vector<64x4xbf16>
    %c0_8 = arith.constant 0 : index
    %c0_9 = arith.constant 0 : index
    %c0_10 = arith.constant 0 : index
    %8 = vector.load %arg2[%c0_8, %c0_9, %c0_10] : memref<2x4x64xf32, #tpu.memory_space<vmem>>, vector<1x4x64xf32>
    %9 = vector.shape_cast %8 : vector<1x4x64xf32> to vector<4x64xf32>
    %10 = arith.truncf %9 : vector<4x64xf32> to vector<4x64xbf16>
    %cst_11 = arith.constant dense<0.000000e+00> : vector<64x64xf32>
    %11 = tpu.matmul %7, %10, %cst_11 {dimension_numbers = #tpu.dot_dimension_numbers<[1], [0], [0], [1], [0, 0, 1, 1], [], []>} : vector<64x4xbf16>, vector<4x64xbf16>, vector<64x64xf32> -> vector<64x64xf32>
    %c0_12 = arith.constant 0 : index
    %c0_13 = arith.constant 0 : index
    %12 = vector.load %arg6[%c0_12, %c0_13] : memref<64x1xf32, #tpu.memory_space<vmem>>, vector<64x1xf32>
    %13 = vector.broadcast %12 : vector<64x1xf32> to vector<64x64xf32>
    %14 = arith.addf %11, %13 : vector<64x64xf32>
    %15 = math.tanh %14 : vector<64x64xf32>
    %16 = vector.broadcast %6 : vector<64x1xf32> to vector<64x64xf32>
    %17 = arith.mulf %15, %16 : vector<64x64xf32>
    %18 = arith.truncf %17 : vector<64x64xf32> to vector<64x64xbf16>
    %c0_14 = arith.constant 0 : index
    %c0_15 = arith.constant 0 : index
    %19 = vector.load %arg7[%c0_14, %c0_15] : memref<33x64xbf16, #tpu.memory_space<vmem>>, vector<33x64xbf16>
    %cst_16 = arith.constant dense<0.000000e+00> : vector<33x64xf32>
    %20 = tpu.matmul %19, %18, %cst_16 {dimension_numbers = #tpu.dot_dimension_numbers<[1], [0], [0], [1], [0, 0, 1, 1], [], []>} : vector<33x64xbf16>, vector<64x64xbf16>, vector<33x64xf32> -> vector<33x64xf32>
    %c0_17 = arith.constant 0 : index
    %c0_18 = arith.constant 0 : index
    %21 = vector.load %arg8[%c0_17, %c0_18] : memref<33x1xf32, #tpu.memory_space<vmem>>, vector<33x1xf32>
    %22 = vector.broadcast %21 : vector<33x1xf32> to vector<33x64xf32>
    %23 = arith.addf %20, %22 : vector<33x64xf32>
    %24 = vector.extract_strided_slice %23 {offsets = [0, 0], sizes = [32, 64], strides = [1, 1]} : vector<33x64xf32> to vector<32x64xf32>
    %25 = vector.extract_strided_slice %23 {offsets = [32, 0], sizes = [1, 64], strides = [1, 1]} : vector<33x64xf32> to vector<1x64xf32>
    %cst_19 = arith.constant dense<0xFF800000> : vector<1xf32>
    %26 = vector.multi_reduction <maximumf>, %25, %cst_19 [1] : vector<1x64xf32> to vector<1xf32>
    %27 = vector.shape_cast %26 : vector<1xf32> to vector<1x1xf32>
    %28 = vector.broadcast %27 : vector<1x1xf32> to vector<1x64xf32>
    %29 = arith.subf %25, %28 : vector<1x64xf32>
    %30 = math.exp %29 : vector<1x64xf32>
    %cst_20 = arith.constant dense<0.000000e+00> : vector<1xf32>
    %31 = vector.multi_reduction <add>, %30, %cst_20 [1] : vector<1x64xf32> to vector<1xf32>
    %32 = vector.shape_cast %31 : vector<1xf32> to vector<1x1xf32>
    %33 = tpu.reciprocal %32 {approx = true} : vector<1x1xf32> -> vector<1x1xf32>
    %34 = vector.broadcast %33 : vector<1x1xf32> to vector<1x64xf32>
    %35 = arith.mulf %30, %34 : vector<1x64xf32>
    %cst_21 = arith.constant dense<0.000000e+00> : vector<1x32xf32>
    %36 = tpu.matmul %35, %24, %cst_21 {dimension_numbers = #tpu.dot_dimension_numbers<[1], [1], [0], [0], [0, 0, 1, 0], [], []>} : vector<1x64xf32>, vector<32x64xf32>, vector<1x32xf32> -> vector<1x32xf32>
    %c0_22 = arith.constant 0 : index
    %c0_23 = arith.constant 0 : index
    %37 = vector.load %arg3[%c0_22, %c0_23] : memref<64x32xbf16, #tpu.memory_space<vmem>>, vector<64x32xbf16>
    %c1 = arith.constant 1 : index
    %c0_24 = arith.constant 0 : index
    %c0_25 = arith.constant 0 : index
    %38 = vector.load %arg1[%c1, %c0_24, %c0_25] : memref<2x32x1xbf16, #tpu.memory_space<vmem>>, vector<1x32x1xbf16>
    %39 = vector.shape_cast %38 : vector<1x32x1xbf16> to vector<32x1xbf16>
    %cst_26 = arith.constant dense<0.000000e+00> : vector<64x1xf32>
    %40 = tpu.matmul %37, %39, %cst_26 {dimension_numbers = #tpu.dot_dimension_numbers<[1], [0], [0], [1], [0, 0, 1, 1], [], []>} : vector<64x32xbf16>, vector<32x1xbf16>, vector<64x1xf32> -> vector<64x1xf32>
    %c0_27 = arith.constant 0 : index
    %c0_28 = arith.constant 0 : index
    %41 = vector.load %arg4[%c0_27, %c0_28] : memref<64x1xf32, #tpu.memory_space<vmem>>, vector<64x1xf32>
    %42 = arith.addf %40, %41 : vector<64x1xf32>
    %43 = math.tanh %42 : vector<64x1xf32>
    %c0_29 = arith.constant 0 : index
    %c0_30 = arith.constant 0 : index
    %44 = vector.load %arg5[%c0_29, %c0_30] : memref<64x4xbf16, #tpu.memory_space<vmem>>, vector<64x4xbf16>
    %c1_31 = arith.constant 1 : index
    %c0_32 = arith.constant 0 : index
    %c0_33 = arith.constant 0 : index
    %45 = vector.load %arg2[%c1_31, %c0_32, %c0_33] : memref<2x4x64xf32, #tpu.memory_space<vmem>>, vector<1x4x64xf32>
    %46 = vector.shape_cast %45 : vector<1x4x64xf32> to vector<4x64xf32>
    %47 = arith.truncf %46 : vector<4x64xf32> to vector<4x64xbf16>
    %cst_34 = arith.constant dense<0.000000e+00> : vector<64x64xf32>
    %48 = tpu.matmul %44, %47, %cst_34 {dimension_numbers = #tpu.dot_dimension_numbers<[1], [0], [0], [1], [0, 0, 1, 1], [], []>} : vector<64x4xbf16>, vector<4x64xbf16>, vector<64x64xf32> -> vector<64x64xf32>
    %c0_35 = arith.constant 0 : index
    %c0_36 = arith.constant 0 : index
    %49 = vector.load %arg6[%c0_35, %c0_36] : memref<64x1xf32, #tpu.memory_space<vmem>>, vector<64x1xf32>
    %50 = vector.broadcast %49 : vector<64x1xf32> to vector<64x64xf32>
    %51 = arith.addf %48, %50 : vector<64x64xf32>
    %52 = math.tanh %51 : vector<64x64xf32>
    %53 = vector.broadcast %43 : vector<64x1xf32> to vector<64x64xf32>
    %54 = arith.mulf %52, %53 : vector<64x64xf32>
    %55 = arith.truncf %54 : vector<64x64xf32> to vector<64x64xbf16>
    %c0_37 = arith.constant 0 : index
    %c0_38 = arith.constant 0 : index
    %56 = vector.load %arg7[%c0_37, %c0_38] : memref<33x64xbf16, #tpu.memory_space<vmem>>, vector<33x64xbf16>
    %cst_39 = arith.constant dense<0.000000e+00> : vector<33x64xf32>
    %57 = tpu.matmul %56, %55, %cst_39 {dimension_numbers = #tpu.dot_dimension_numbers<[1], [0], [0], [1], [0, 0, 1, 1], [], []>} : vector<33x64xbf16>, vector<64x64xbf16>, vector<33x64xf32> -> vector<33x64xf32>
    %c0_40 = arith.constant 0 : index
    %c0_41 = arith.constant 0 : index
    %58 = vector.load %arg8[%c0_40, %c0_41] : memref<33x1xf32, #tpu.memory_space<vmem>>, vector<33x1xf32>
    %59 = vector.broadcast %58 : vector<33x1xf32> to vector<33x64xf32>
    %60 = arith.addf %57, %59 : vector<33x64xf32>
    %61 = vector.extract_strided_slice %60 {offsets = [0, 0], sizes = [32, 64], strides = [1, 1]} : vector<33x64xf32> to vector<32x64xf32>
    %62 = vector.extract_strided_slice %60 {offsets = [32, 0], sizes = [1, 64], strides = [1, 1]} : vector<33x64xf32> to vector<1x64xf32>
    %cst_42 = arith.constant dense<0xFF800000> : vector<1xf32>
    %63 = vector.multi_reduction <maximumf>, %62, %cst_42 [1] : vector<1x64xf32> to vector<1xf32>
    %64 = vector.shape_cast %63 : vector<1xf32> to vector<1x1xf32>
    %65 = vector.broadcast %64 : vector<1x1xf32> to vector<1x64xf32>
    %66 = arith.subf %62, %65 : vector<1x64xf32>
    %67 = math.exp %66 : vector<1x64xf32>
    %cst_43 = arith.constant dense<0.000000e+00> : vector<1xf32>
    %68 = vector.multi_reduction <add>, %67, %cst_43 [1] : vector<1x64xf32> to vector<1xf32>
    %69 = vector.shape_cast %68 : vector<1xf32> to vector<1x1xf32>
    %70 = tpu.reciprocal %69 {approx = true} : vector<1x1xf32> -> vector<1x1xf32>
    %71 = vector.broadcast %70 : vector<1x1xf32> to vector<1x64xf32>
    %72 = arith.mulf %67, %71 : vector<1x64xf32>
    %cst_44 = arith.constant dense<0.000000e+00> : vector<1x32xf32>
    %73 = tpu.matmul %72, %61, %cst_44 {dimension_numbers = #tpu.dot_dimension_numbers<[1], [1], [0], [0], [0, 0, 1, 0], [], []>} : vector<1x64xf32>, vector<32x64xf32>, vector<1x32xf32> -> vector<1x32xf32>
    %74 = tpu.concatenate %36, %73 in 0 : vector<1x32xf32>, vector<1x32xf32> -> vector<2x32xf32>
    %75 = vector.shape_cast %74 : vector<2x32xf32> to vector<1x2x32xf32>
    %c0_45 = arith.constant 0 : index
    %c0_46 = arith.constant 0 : index
    %c0_47 = arith.constant 0 : index
    %76 = vector.load %arg9[%c0_45, %c0_46, %c0_47] : memref<1x2x32xf32, #tpu.memory_space<vmem>>, vector<1x2x32xf32>
    tpu.vector_store %arg9[%c0_45, %c0_46, %c0_47], %75 {strides = array<i32>} : memref<1x2x32xf32, #tpu.memory_space<vmem>>, vector<1x2x32xf32>,
    return
  }
  func.func @transform_0(%arg0: i32) -> (i32, i32, i32) {
    %c0_i32 = arith.constant 0 : i32
    %c0_i32_0 = arith.constant 0 : i32
    %c0_i32_1 = arith.constant 0 : i32
    return %arg0, %c0_i32, %c0_i32_0 : i32, i32, i32
  }
  func.func @transform_1(%arg0: i32) -> (i32, i32, i32) {
    %c0_i32 = arith.constant 0 : i32
    %c0_i32_0 = arith.constant 0 : i32
    %c0_i32_1 = arith.constant 0 : i32
    return %arg0, %c0_i32, %c0_i32_0 : i32, i32, i32
  }
  func.func @transform_2(%arg0: i32) -> (i32, i32) {
    %c0_i32 = arith.constant 0 : i32
    %c0_i32_0 = arith.constant 0 : i32
    %c0_i32_1 = arith.constant 0 : i32
    return %c0_i32, %c0_i32_0 : i32, i32
  }
  func.func @transform_3(%arg0: i32) -> (i32, i32) {
    %c0_i32 = arith.constant 0 : i32
    %c0_i32_0 = arith.constant 0 : i32
    %c0_i32_1 = arith.constant 0 : i32
    return %c0_i32, %c0_i32_0 : i32, i32
  }
  func.func @transform_4(%arg0: i32) -> (i32, i32) {
    %c0_i32 = arith.constant 0 : i32
    %c0_i32_0 = arith.constant 0 : i32
    %c0_i32_1 = arith.constant 0 : i32
    return %c0_i32, %c0_i32_0 : i32, i32
  }
  func.func @transform_5(%arg0: i32) -> (i32, i32) {
    %c0_i32 = arith.constant 0 : i32
    %c0_i32_0 = arith.constant 0 : i32
    %c0_i32_1 = arith.constant 0 : i32
    return %c0_i32, %c0_i32_0 : i32, i32
  }
  func.func @transform_6(%arg0: i32) -> (i32, i32) {
    %c0_i32 = arith.constant 0 : i32
    %c0_i32_0 = arith.constant 0 : i32
    %c0_i32_1 = arith.constant 0 : i32
    return %c0_i32, %c0_i32_0 : i32, i32
  }
  func.func @transform_7(%arg0: i32) -> (i32, i32) {
    %c0_i32 = arith.constant 0 : i32
    %c0_i32_0 = arith.constant 0 : i32
    %c0_i32_1 = arith.constant 0 : i32
    return %c0_i32, %c0_i32_0 : i32, i32
  }
  func.func @transform_8(%arg0: i32) -> (i32, i32, i32) {
    %c0_i32 = arith.constant 0 : i32
    %c0_i32_0 = arith.constant 0 : i32
    %c0_i32_1 = arith.constant 0 : i32
    return %arg0, %c0_i32, %c0_i32_0 : i32, i32, i32
  }
}

</mosaic_0001>

<bundles_post_ra>
// kernel: tpu_custom_call.1
= control target key start
LH: loop header
LB: loop body
LE: loop exit
PB: predicated region body
PF: predicated region fallthrough
CT: control target
= control target key end

     0   :  { %13 = vsyncpa [#allocation3], 0  ;;  %s1772_s0 = inlined_call_operand.vmem [shape: bf16[4,32,1], index: 0, kind: input, shape index: {}]   ;;  %s1773_s1 = inlined_call_operand.vmem [shape: f32[4,4,64], index: 1, kind: input, shape index: {}]   ;;  %s1774_s2 = inlined_call_operand.vmem [shape: bf16[64,32], index: 2, kind: input, shape index: {}]   ;;  %s1775_s3 = inlined_call_operand.vmem [shape: f32[64,1], index: 3, kind: input, shape index: {}]   ;;  %s1776_s4 = inlined_call_operand.vmem [shape: bf16[64,4], index: 4, kind: input, shape index: {}]   ;;  %s1777_s5 = inlined_call_operand.vmem [shape: f32[64,1], index: 5, kind: input, shape index: {}]   ;;  %s1778_s6 = inlined_call_operand.vmem [shape: bf16[33,64], index: 6, kind: input, shape index: {}]   ;;  %s1779_s7 = inlined_call_operand.vmem [shape: f32[33,1], index: 7, kind: input, shape index: {}]   ;;  %s1780_s8 = inlined_call_operand.hbm [shape: f32[2,2,32], index: 8, kind: output, shape index: {}]  }
   0x1   :  { %15 = vsyncpa [#allocation3 + $0x1], 0  ;;  %s1410_s27 = smov 0   ;;  %s1412_s28 = smov 0  }
   0x2   :  { %s1414_s29 = smov 0   ;;  %s1416_s30 = smov 0  }
   0x3 LB: > { %s1057_s9 = sadd.s32 4294967295, %s1362_s30   ;;  %s1058_s10 = sadd.s32 4294967294, %s1362_s30   ;;  %s1362_s30 = sphi %s1416_s30, %s1786_s30   ;;  %s1358_s29 = sphi %s1414_s29, %s1785_s29   ;;  %s1354_s28 = sphi %s1412_s28, %s1784_s28   ;;  %s1350_s27 = sphi %s1410_s27, %s1783_s27  }
   0x4   : > { %s1433_s11 = sadd.s32 1, %s1362_s30   ;;  %s206_s12 = sadd.s32 1, %s1358_s29 }
   0x5   : > { %s203_s13 = ssub.s32 %s1362_s30, %s1433_s11  ;;  %p216_p0 = scmp.ne.s32.totalorder %s1358_s29, %s1354_s28 }
   0x6   : > { %p204_p1 = scmp.eq.s32.totalorder %s203_s13, 0  ;;  %p217_p2 = scmp.eq.s32.totalorder %s1057_s9, 1 }
   0x7   : > { %p222_p3 = scmp.ne.s32.totalorder %s1354_s28, %s1350_s27  ;;  %p223_p4 = scmp.eq.s32.totalorder %s1058_s10, 1 }
   0x8   : > { %s1443_s14 = scalar_select %p204_p1, %s1358_s29, %s206_s12  }
   0x9   : > { %p1445_p5 = por %p217_p2, %p216_p0  ;;  %p1449_p6 = por %p223_p4, %p222_p3 }
   0xa   : > { %p1061_p7 = scmp.ge.s32.totalorder %s1362_s30, 1  ;;  %p278_p8 = scmp.lt.s32.totalorder %s1362_s30, 3 }
   0xc   : > { %p279_p9 = pnand %p1061_p7, %p278_p8 }
   0xd   : > { %s1455_s17 = sshll.u32 (!%p279_p9), %s1057_s9, 1  ;;  %s1320_s21 = scalar_lea.hbm (!%p279_p9), %s1780_s8, 4 }
   0xe   : > { %282 = sbr.rel (%p279_p9) target bundleno = 1639 (0x667), region = 52  ;;  %p319_p10 = scmp.lt.s32.totalorder (!%p279_p9), %s1455_s17, 3 }
   0xf   : > { %s982_s26 = scalar_lea.hbm (!%p279_p9), %s1780_s8, %s1455_s17 }
  0x10   : > { %s986_s12 = sshll.u32 (!%p279_p9), %s982_s26, 4  ;;  %s987_s12 = int_to_ptr.hbm [resolvable:$true] %s986_s12 }
  0x13   : > { %s320_s18 = scalar_select %p319_p10, %s1455_s17, 3  ;;  %v1469_v2 = vld [vmem:[%s1774_s2] sm:$0xff]  ;;  %vm384_vm0 = vcmask 261120   ;;  %v1476_v3 = vld [vmem:[%s1774_s2 + $0x8] sm:$0xff]  ;;  %vm525_vm1 = vcmask 1041408   ;;  %vm512_vm2 = vcmask 31744  }
  0x14   : > { %v1490_v7 = vld [vmem:[%s1776_s4] sm:$0xff]  ;;  %v1497_v8 = vld [vmem:[%s1774_s2 + $0x10] sm:$0xff]  ;;  %v1504_v9 = vld [vmem:[%s1776_s4 + $0x8] sm:$0xff]  ;;  %v1364_v13 = vmov 0   ;;  %vm666_vm3 = vcmask 523264   ;;  %vm699_vm4 = vcmask 516096  }
  0x15   : > { %s1165_s19 = sshll.u32 %s320_s18, 4  ;;  %s1067_s25 = sshll.u32 %s320_s18, 2  ;;  %v1511_v10 = vld [vmem:[%s1774_s2 + $0x18] sm:$0xff]  ;;  %v1518_v11 = vld [vmem:[%s1776_s4 + $0x10] sm:$0xff]  ;;  %1225 = vset.pattern.permute.xlu0 %v1364_v13  ;;  %1226 = vset.pattern.permute.xlu1 %v1364_v13  ;;  %v448_v14 = vld [vmem:[%s1777_s5 + $0x20] sm:$0xff]  ;;  %vm967_vm5 = vcmask 1040384  }
  0x16   : > { %s1462_s22 = scalar_lea.vmem %s1772_s0, %s1165_s19  ;;  %s1481_s13 = scalar_lea.vmem %s1773_s1, %s1067_s25  ;;  %v450_v12 = vld [vmem:[%s1777_s5 + $0x30] sm:$0xff]  ;;  %1227 = vset.pattern.permute.xlu2 %v1364_v13  ;;  %474 = vperm.xlu1 %1226, %v448_v14   ;;  %v451_v15 = vld [vmem:[%s1777_s5 + $0x38] sm:$0xff]  ;;  %v449_v17 = vld [vmem:[%s1777_s5 + $0x28] sm:$0xff]  ;;  %vm969_vm6 = vcmask 254976  }
  0x17   : > { %v1171_v0 = vld [vmem:[%s1462_s22 + $0x8] sm:$0xff]  ;;  %v1170_v1 = vld [vmem:[%s1462_s22] sm:$0xff]  ;;  %484 = vperm.xlu0 %1225, %v450_v12   ;;  %v1534_v16 = vld [vmem:[%s1776_s4 + $0x18] sm:$0xff] }
  0x18   : > { %403 = vmatpush.bf16.msra.mxu0 %v1171_v0  ;;  %v442_v4 = vld [vmem:[%s1481_s13] sm:$0xf]  ;;  %v445_v18 = vld [vmem:[%s1777_s5 + $0x8] sm:$0xff]  ;;  %v446_v19 = vld [vmem:[%s1777_s5 + $0x10] sm:$0xff] }
  0x19   : > { %v443_v5 = vpack.c.bf16 %v442_v4, %v442_v4  ;;  %464 = vperm.xlu2 %1227, %v446_v19   ;;  %v447_v21 = vld [vmem:[%s1777_s5 + $0x18] sm:$0xff]  ;;  %v444_v23 = vld [vmem:[%s1777_s5] sm:$0xff]  ;;  %v1562_v29 = vld [vmem:[%s1775_s3 + $0x28] sm:$0xff] }
  0x1a   : > { %v1556_v26 = vld [vmem:[%s1775_s3 + $0x20] sm:$0xff]  ;;  %v1574_v35 = vld [vmem:[%s1775_s3 + $0x30] sm:$0xff]  ;;  %v1586_v41 = vld [vmem:[%s1775_s3 + $0x38] sm:$0xff] }
  0x1b   : > { %v527_v6 = vsel %vm525_vm1, %v443_v5, 0  ;;  %v1568_v33 = vld [vmem:[%s1775_s3] sm:$0xff]  ;;  %v1580_v39 = vld [vmem:[%s1775_s3 + $0x10] sm:$0xff]  ;;  %v1592_v46 = vld [vmem:[%s1775_s3 + $0x8] sm:$0xff] }
  0x1c   : > { %404 = vmatpush.bf16.msra.mxu0 %v1170_v1  ;;  %536 = vmatpush.bf16.msra.mxu1 %v527_v6  ;;  %v1597_v47 = vld [vmem:[%s1775_s3 + $0x18] sm:$0xff]  ;;  %v627_v54 = vld [vmem:[%s1779_s7 + $0x20] sm:$0x1]  ;;  %v625_v56 = vld [vmem:[%s1779_s7 + $0x10] sm:$0xff] }
  0x1d   : > { %1180 = vmatpush.bf16.msra.mxu3 %v527_v6  ;;  %v626_v55 = vld [vmem:[%s1779_s7 + $0x18] sm:$0xff]  ;;  %v624_v57 = vld [vmem:[%s1779_s7 + $0x8] sm:$0xff]  ;;  %v623_v58 = vld [vmem:[%s1779_s7] sm:$0xff] }
  0x1e   : > { %479 = vperm.xlu1 %1226, %v449_v17  }
  0x1f   : > { %1092 = vmatmul.msk.bf16.vlgmr.msra.gmra.mxu0 %vm384_vm0, %v1469_v2  ;;  %1112 = vmatmul.msk.bf16.vlgmr.msra.gmra.mxu1 %vm512_vm2, %v1490_v7 }
  0x20   : > { %489 = vperm.xlu0 %1225, %v451_v15   ;;  %1115 = vmatmul.msk.bf16.vlgmr.msra.gmra.mxu3 %vm512_vm2, %v1534_v16 }
  0x21   : > { %469 = vperm.xlu2 %1227, %v447_v21  }
  0x28   : > { %459 = vperm.xlu0 %1225, %v445_v18  }
  0x29   : > { %454 = vperm.xlu2 %1227, %v444_v23  }
  0x2f   : > { %1093 = vmatmul.msk.bf16.gmra.mxu0 %vm384_vm0, %v1476_v3  ;;  %1113 = vmatmul.msk.bf16.gmra.mxu1 %vm512_vm2, %v1504_v9 }
  0x3f   : > { %1094 = vmatmul.msk.bf16.gmra.mxu0 %vm384_vm0, %v1497_v8  ;;  %1114 = vmatmul.msk.bf16.gmra.mxu1 %vm512_vm2, %v1518_v11 }
  0x4f   : > { %1095 = vmatmul.msk.bf16.gmra.mxu0 %vm384_vm0, %v1511_v10 }
  0x73   : > { %v1618_v0 = vpop.permute.xlu2 %464 }
  0x7b   : > { %v1624_v12 = vpop.permute.xlu2 %469 }
  0x83   : > { %v1631_v19 = vpop.permute.xlu2 %454 }
  0x88   : > { %v1620_v1 = vpop.permute.xlu1 %474 }
  0x89   : > { %v1616_v62 = vpop.permute.xlu0 %484 }
  0x90   : > { %v1626_v13 = vpop.permute.xlu1 %479 }
  0x92   : > { %v1622_v4 = vpop.permute.xlu0 %489 }
  0x9a   : > { %v1628_v14 = vpop.permute.xlu0 %459 }
  0x9c   : > { %v406_v20 = vpop.f32.mrf.mxu0  ;;  %v538_v59 = vpop.f32.mrf.mxu1 }
  0x9d   : > { %v407_v34 = vadd.f32 %v406_v20, %v1568_v33 }
  0xa3   : > { %v553_v5 = vpop.f32.mrf.mxu3 }
  0xa4   : > { %v408_v22 = vpop.f32.mrf.mxu0  ;;  %v540_v60 = vpop.f32.mrf.mxu1  ;;  %v554_v20 = vadd.f32 %v553_v5, %v1616_v62 }
  0xa5   : > { %v409_v48 = vadd.f32 %v408_v22, %v1592_v46 }
  0xab   : > { %v555_v15 = vpop.f32.mrf.mxu3 }
  0xac   : > { %v411_v24 = vpop.f32.mrf.mxu0  ;;  %v543_v61 = vpop.f32.mrf.mxu1  ;;  %v556_v21 = vadd.f32 %v555_v15, %v1622_v4 }
  0xad   : > { %v412_v40 = vadd.f32 %v411_v24, %v1580_v39 }
  0xb4   : > { %v413_v25 = vpop.f32.mrf.mxu0  ;;  %v545_v63 = vpop.f32.mrf.mxu1 }
  0xb5   : > { %v414_v49 = vadd.f32 %v413_v25, %v1597_v47  ;;  %v544_v25 = vadd.f32 %v543_v61, %v1618_v0 }
  0xbc   : > { %v416_v27 = vpop.f32.mrf.mxu0  ;;  %v548_v6 = vpop.f32.mrf.mxu1 }
  0xbd   : > { %v417_v28 = vadd.f32 %v416_v27, %v1556_v26  ;;  %v549_v17 = vadd.f32 %v548_v6, %v1620_v1 }
  0xbf   : > { %1228 = vtanh.f32 %v417_v28  ;;  %v546_v28 = vadd.f32 %v545_v63, %v1624_v12 }
  0xc4   : > { %v418_v30 = vpop.f32.mrf.mxu0  ;;  %v550_v18 = vpop.f32.mrf.mxu1 }
  0xc5   : > { %v1229_v31 = vpop.eup %1228  ;;  %v419_v32 = vadd.f32 %v418_v30, %v1562_v29  ;;  %v551_v22 = vadd.f32 %v550_v18, %v1626_v13 }
  0xc6   : > { %588 = vperm.xlu1 %1226, %v1229_v31  }
  0xc7   : > { %1230 = vtanh.f32 %v419_v32 }
  0xc8   : > { %1232 = vtanh.f32 %v407_v34  ;;  %v541_v34 = vadd.f32 %v540_v60, %v1628_v14 }
  0xcc   : > { %v421_v36 = vpop.f32.mrf.mxu0 }
  0xcd   : > { %v1231_v37 = vpop.eup %1230  ;;  %v422_v38 = vadd.f32 %v421_v36, %v1574_v35 }
  0xce   : > { %593 = vperm.xlu2 %1227, %v1231_v37   ;;  %v1233_v42 = vpop.eup %1232 }
  0xcf   : > { %1234 = vtanh.f32 %v422_v38 }
  0xd0   : > { %1236 = vtanh.f32 %v412_v40 }
  0xd4   : > { %v423_v43 = vpop.f32.mrf.mxu0 }
  0xd5   : > { %v1235_v44 = vpop.eup %1234  ;;  %v424_v45 = vadd.f32 %v423_v43, %v1586_v41  ;;  %v539_v43 = vadd.f32 %v538_v59, %v1631_v19 }
  0xd6   : > { %598 = vperm.xlu0 %1225, %v1235_v44   ;;  %568 = vperm.xlu2 %1227, %v1233_v42   ;;  %v1237_v50 = vpop.eup %1236 }
  0xd7   : > { %1238 = vtanh.f32 %v424_v45 }
  0xd8   : > { %1240 = vtanh.f32 %v409_v48 }
  0xd9   : > { %1242 = vtanh.f32 %v414_v49 }
  0xda   : > { %1244 = vtanh.f32 %v549_v17 }
  0xdb   : > { %1246 = vtanh.f32 %v554_v20  ;;  %v1648_v20 = vld [vmem:[%s1778_s6] sm:$0xff] }
  0xdc   : > { %1248 = vtanh.f32 %v556_v21 }
  0xdd   : > { %v1239_v51 = vpop.eup %1238  ;;  %1250 = vtanh.f32 %v551_v22  ;;  %v1659_v22 = vld [vmem:[%s1778_s6 + $0x8] sm:$0xff] }
  0xde   : > { %603 = vperm.xlu1 %1226, %v1239_v51   ;;  %578 = vperm.xlu0 %1225, %v1237_v50   ;;  %v1241_v52 = vpop.eup %1240  ;;  %1252 = vtanh.f32 %v544_v25 }
  0xdf   : > { %v1243_v53 = vpop.eup %1242  ;;  %1254 = vtanh.f32 %v546_v28 }
  0xe0   : > { %v1245_v27 = vpop.eup %1244  ;;  %1256 = vtanh.f32 %v541_v34 }
  0xe1   : > { %v1247_v30 = vpop.eup %1246  ;;  %1258 = vtanh.f32 %v539_v43 }
  0xe2   : > { %v1249_v32 = vpop.eup %1248 }
  0xe3   : > { %v1251_v42 = vpop.eup %1250 }
  0xe4   : > { %v1253_v49 = vpop.eup %1252 }
  0xe5   : > { %v1255_v51 = vpop.eup %1254 }
  0xe6   : > { %583 = vperm.xlu1 %1226, %v1243_v53   ;;  %573 = vperm.xlu0 %1225, %v1241_v52  }
  0xee   : > { %650 = vperm.xlu1 %1226, %v627_v54   ;;  %645 = vperm.xlu0 %1225, %v626_v55   ;;  %v1148_v54 = vld [vmem:[%s1481_s13 + $0x4] sm:$0xf]  ;;  %s1314_s13 = sshra.s32 %s987_s12, 4  ;;  %s1315_s13 = int_to_ptr.hbm [resolvable:$true] %s1314_s13 }
  0xef   : > { %v802_v63 = vpack.c.bf16 %v1148_v54, %v1148_v54  ;;  %s1316_s19 = scalar_lea.hbm %s1315_s13, 2  ;;  %p1321_p0 = scmp.lt.s32.totalorder %s1315_s13, %s1780_s8 }
  0xf0   : > { %p1317_p11 = scmp.ne.s32.totalorder %s1315_s13, %s1316_s19  ;;  %p1322_p1 = scmp.lt.s32.totalorder %s1320_s21, %s1316_s19 }
  0xf1   : > { %v804_v18 = vsel %vm525_vm1, %v802_v63, 0 }
  0xf2   : > { %p1318_p12 = pnand %p1317_p11, %p1445_p5  ;;  %p1323_p2 = por %p1322_p1, %p1321_p0 }
  0xf4   : > { %p1319_p13 = pneg %p1318_p12 }
  0xf6   : > { %640 = vperm.xlu1 %1226, %v625_v56   ;;  %p1324_p3 = pnand %p1323_p2, %p1319_p13 }
  0xfe   : > { %635 = vperm.xlu1 %1226, %v624_v57   ;;  %v622_v57 = vld [vmem:[%s1778_s6 + $0x10] sm:$0x1] }
  0xff   : > { %v662_v6 = vunpack.c.l.b16 %v622_v57 }
 0x101   : > { %v1650_v21 = vpack.c.b16 %v662_v6, %v662_v6 }
 0x106   : > { %630 = vperm.xlu1 %1226, %v623_v58   ;;  %v1257_v58 = vpop.eup %1256 }
 0x107   : > { %v1259_v5 = vpop.eup %1258 }
 0x128   : > { %v594_v31 = vpop.permute.xlu2 %593 }
 0x129   : > { %v611_v48 = vmul.f32 %v1251_v42, %v594_v31 }
 0x130   : > { %v569_v59 = vpop.permute.xlu2 %568 }
 0x131   : > { %v606_v15 = vmul.f32 %v1259_v5, %v569_v59 }
 0x138   : > { %v589_v23 = vpop.permute.xlu1 %588 }
 0x139   : > { %v610_v44 = vmul.f32 %v1245_v27, %v589_v23 }
 0x13b   : > { %v616_v50 = vpack.c.bf16 %v611_v48, %v610_v44 }
 0x148   : > { %v599_v24 = vpop.permute.xlu0 %598 }
 0x149   : > { %v612_v38 = vmul.f32 %v1247_v30, %v599_v24 }
 0x150   : > { %v604_v36 = vpop.permute.xlu1 %603  ;;  %v579_v37 = vpop.permute.xlu0 %578 }
 0x151   : > { %v613_v40 = vmul.f32 %v1249_v32, %v604_v36  ;;  %v608_v55 = vmul.f32 %v1253_v49, %v579_v37  ;;  %v1179_v49 = vld [vmem:[%s1462_s22 + $0x18] sm:$0xff] }
 0x153   : > { %v617_v45 = vpack.c.bf16 %v613_v40, %v612_v38 }
 0x155   : > { %680 = vmatpush.bf16.msrb.mxu0 %v617_v45  ;;  %1181 = vmatpush.bf16.msra.mxu2 %v617_v45 }
 0x158   : > { %v584_v52 = vpop.permute.xlu1 %583  ;;  %v574_v53 = vpop.permute.xlu0 %573 }
 0x159   : > { %v609_v56 = vmul.f32 %v1255_v51, %v584_v52  ;;  %681 = vmatpush.bf16.msrb.mxu0 %v616_v50  ;;  %1182 = vmatpush.bf16.msra.mxu2 %v616_v50  ;;  %v607_v60 = vmul.f32 %v1257_v58, %v574_v53  ;;  %v1178_v50 = vld [vmem:[%s1462_s22 + $0x10] sm:$0xff]  ;;  %s315_s22 = sand.u32 1, %s1354_s28  }
 0x15a   : > { %s1062_s23 = sshll.u32 %s315_s22, 1  ;;  %s972_s18 = scalar_lea.sflag [#allocation3], %s315_s22 }
 0x15b   : > { %v615_v61 = vpack.c.bf16 %v609_v56, %v608_v55  ;;  %v614_v17 = vpack.c.bf16 %v607_v60, %v606_v15  ;;  %s317_s9 = scalar_lea.vmem [#allocation2], %s1062_s23 }
 0x15c   : > { %s984_s10 = sshll.u32 %s317_s9, 4  ;;  %s985_s10 = int_to_ptr.vmem [resolvable:$true] %s984_s10 }
 0x15d   : > { %682 = vmatpush.bf16.msrb.mxu0 %v615_v61  ;;  %1183 = vmatpush.bf16.msra.mxu2 %v615_v61 }
 0x160   : > { %v1671_v24 = vpop.permute.xlu1 %650  ;;  %v1677_v32 = vpop.permute.xlu0 %645 }
 0x161   : > { %683 = vmatpush.bf16.msrb.mxu0 %v614_v17  ;;  %1184 = vmatpush.bf16.msra.mxu2 %v614_v17 }
 0x164   : > { %1124 = vmatmul.msk.bf16.vlgmr.msrb.gmra.mxu0 %vm666_vm3, %v1648_v20  ;;  %1126 = vmatmul.msk.bf16.vlgmr.msra.gmra.mxu2 %vm666_vm3, %v1650_v21 }
 0x165   : > { %813 = vmatpush.bf16.msrb.mxu2 %v804_v18 }
 0x168   : > { %v1675_v31 = vpop.permute.xlu1 %640 }
 0x170   : > { %v1680_v34 = vpop.permute.xlu1 %635 }
 0x174   : > { %1125 = vmatmul.msk.bf16.gmra.mxu0 %vm666_vm3, %v1659_v22  ;;  %1149 = vmatmul.msk.bf16.vlgmr.msrb.gmra.mxu2 %vm512_vm2, %v1490_v7 }
 0x178   : > { %v1687_v38 = vpop.permute.xlu1 %630 }
 0x184   : > { %1150 = vmatmul.msk.bf16.gmra.mxu2 %vm512_vm2, %v1504_v9 }
 0x194   : > { %1151 = vmatmul.msk.bf16.gmra.mxu2 %vm512_vm2, %v1518_v11 }
 0x1a4   : > { %1152 = vmatmul.msk.bf16.gmra.mxu2 %vm512_vm2, %v1534_v16 }
 0x1e1   : > { %v685_v23 = vpop.f32.mrf.mxu0 }
 0x1e2   : > { %v686_v40 = vadd.f32 %v685_v23, %v1687_v38 }
 0x1e7   : > { %v695_v25 = vpop.f32.mrf.mxu2 }
 0x1e8   : > { %v696_v27 = vadd.f32 %v695_v25, %v1671_v24 }
 0x1e9   : > { %v687_v28 = vpop.f32.mrf.mxu0 }
 0x1ea   : > { %v700_v30 = vsel %vm699_vm4, %v696_v27, -inf  ;;  %v688_v37 = vadd.f32 %v687_v28, %v1680_v34 }
 0x1eb   : > { %701 = vmax.xlane.f32.xlu2 %v700_v30 }
 0x1ef   : > { %v697_v7 = vpop.f32.mrf.mxu2 }
 0x1f1   : > { %v690_v9 = vpop.f32.mrf.mxu0 }
 0x1f2   : > { %v691_v36 = vadd.f32 %v690_v9, %v1675_v31 }
 0x1f9   : > { %v692_v11 = vpop.f32.mrf.mxu0 }
 0x1fa   : > { %v693_v16 = vadd.f32 %v692_v11, %v1677_v32 }
 0x1fc   : > { %1127 = vmatpush.xpose.msk.msrb.mxu3 %vm666_vm3, %v693_v16 }
 0x200   : > { %1128 = vmatpush.xpose.msk.msrb.mxu3 %vm666_vm3, %v691_v36 }
 0x204   : > { %1129 = vmatpush.xpose.msk.msrb.mxu3 %vm666_vm3, %v688_v37 }
 0x208   : > { %1130 = vmatpush.xpose.msk.msrb.mxu3 %vm666_vm3, %v686_v40 }
 0x20c   : > { %769 = vmatpush.bf16.msra.mxu3 %v1179_v49 }
 0x210   : > { %770 = vmatpush.bf16.msra.mxu3 %v1178_v50 }
 0x25e   : > { %v702_v42 = vpop.xlane.xlu2 %701 }
 0x25f   : > { %v703_v43 = vsub.f32 %v696_v27, %v702_v42  ;;  %v815_v27 = vpop.f32.mrf.mxu2 }
 0x261   : > { %v704_v44 = vmul.f32 1.442695, %v703_v43 }
 0x263   : > { %1260 = vpow2.f32 %v704_v44 }
 0x267   : > { %v817_v28 = vpop.f32.mrf.mxu2 }
 0x269   : > { %v1261_v45 = vpop.eup %1260 }
 0x26a   : > { %v706_v48 = vsel %vm699_vm4, %v1261_v45, 0.0 }
 0x26b   : > { %707 = vadd.xlane.f32.xlu0 %v706_v48 }
 0x26f   : > { %v820_v30 = vpop.f32.mrf.mxu2 }
 0x270   : > { %v821_v43 = vadd.f32 %v820_v30, %v1618_v0  ;;  %v818_v0 = vadd.f32 %v817_v28, %v1628_v14 }
 0x277   : > { %v822_v7 = vpop.f32.mrf.mxu2 }
 0x278   : > { %v823_v44 = vadd.f32 %v822_v7, %v1624_v12 }
 0x27f   : > { %v825_v9 = vpop.f32.mrf.mxu2 }
 0x280   : > { %v826_v42 = vadd.f32 %v825_v9, %v1620_v1  ;;  %v816_v1 = vadd.f32 %v815_v27, %v1631_v19 }
 0x2de   : > { %v708_v51 = vpop.xlane.xlu0 %707 }
 0x2df   : > { %1262 = vrcp.f32 %v708_v51 }
 0x2e5   : > { %v1263_v52 = vpop.eup %1262 }
 0x2e6   : > { %v710_v53 = vmul.f32 %v1263_v52, %v1261_v45 }
 0x2e8   : > { %1131 = vmatmul.msk.f32.vlgmr.msrb.gmra.mxu3 %vm666_vm3, %v710_v53 }
 0x2f0   : > { %1144 = vmatmul.msk.bf16.vlgmr.msra.gmra.mxu3 %vm384_vm0, %v1469_v2 }
 0x300   : > { %1145 = vmatmul.msk.bf16.gmra.mxu3 %vm384_vm0, %v1476_v3 }
 0x310   : > { %1146 = vmatmul.msk.bf16.gmra.mxu3 %vm384_vm0, %v1497_v8 }
 0x320   : > { %1147 = vmatmul.msk.bf16.gmra.mxu3 %vm384_vm0, %v1511_v10 }
 0x36b   : > { %v1703_v54 = vpop.f32.mrf.mxu3 }
 0x373   : > { %v772_v55 = vpop.f32.mrf.mxu3 }
 0x374   : > { %v773_v23 = vadd.f32 %v772_v55, %v1568_v33 }
 0x37b   : > { %v774_v56 = vpop.f32.mrf.mxu3 }
 0x37c   : > { %v775_v3 = vadd.f32 %v774_v56, %v1592_v46 }
 0x383   : > { %v777_v57 = vpop.f32.mrf.mxu3 }
 0x384   : > { %v778_v46 = vadd.f32 %v777_v57, %v1580_v39 }
 0x38b   : > { %v779_v58 = vpop.f32.mrf.mxu3 }
 0x38c   : > { %v780_v59 = vadd.f32 %v779_v58, %v1597_v47 }
 0x38e   : > { %1264 = vtanh.f32 %v780_v59 }
 0x393   : > { %v782_v60 = vpop.f32.mrf.mxu3 }
 0x394   : > { %v1265_v2 = vpop.eup %1264  ;;  %v783_v61 = vadd.f32 %v782_v60, %v1556_v26 }
 0x395   : > { %860 = vperm.xlu0 %1225, %v1265_v2  }
 0x396   : > { %1266 = vtanh.f32 %v783_v61 }
 0x397   : > { %1268 = vtanh.f32 %v775_v3 }
 0x39b   : > { %v784_v8 = vpop.f32.mrf.mxu3 }
 0x39c   : > { %v1267_v63 = vpop.eup %1266  ;;  %v785_v10 = vadd.f32 %v784_v8, %v1562_v29 }
 0x39d   : > { %865 = vperm.xlu2 %1227, %v1267_v63   ;;  %v1269_v5 = vpop.eup %1268 }
 0x39e   : > { %1270 = vtanh.f32 %v785_v10 }
 0x3a3   : > { %v787_v6 = vpop.f32.mrf.mxu3 }
 0x3a4   : > { %v1271_v15 = vpop.eup %1270  ;;  %v788_v47 = vadd.f32 %v787_v6, %v1574_v35 }
 0x3a5   : > { %870 = vperm.xlu1 %1226, %v1271_v15   ;;  %850 = vperm.xlu2 %1227, %v1269_v5  }
 0x3a6   : > { %1272 = vtanh.f32 %v788_v47 }
 0x3ab   : > { %v789_v26 = vpop.f32.mrf.mxu3 }
 0x3ac   : > { %v1273_v17 = vpop.eup %1272  ;;  %v790_v18 = vadd.f32 %v789_v26, %v1586_v41  ;;  %v827_v41 = vpop.f32.mrf.mxu2 }
 0x3ad   : > { %875 = vperm.xlu1 %1226, %v1273_v17   ;;  %v828_v33 = vadd.f32 %v827_v41, %v1626_v13 }
 0x3ae   : > { %1274 = vtanh.f32 %v790_v18 }
 0x3af   : > { %1276 = vtanh.f32 %v778_v46 }
 0x3b0   : > { %1278 = vtanh.f32 %v773_v23 }
 0x3b4   : > { %v1275_v29 = vpop.eup %1274  ;;  %v830_v11 = vpop.f32.mrf.mxu2 }
 0x3b5   : > { %880 = vperm.xlu1 %1226, %v1275_v29   ;;  %v1277_v25 = vpop.eup %1276  ;;  %v831_v39 = vadd.f32 %v830_v11, %v1616_v62 }
 0x3b6   : > { %v1279_v35 = vpop.eup %1278 }
 0x3b7   : > { %1280 = vtanh.f32 %v831_v39 }
 0x3bc   : > { %v832_v36 = vpop.f32.mrf.mxu2 }
 0x3bd   : > { %855 = vperm.xlu1 %1226, %v1277_v25   ;;  %v833_v37 = vadd.f32 %v832_v36, %v1622_v4  ;;  %v1281_v45 = vpop.eup %1280 }
 0x3bf   : > { %1282 = vtanh.f32 %v833_v37 }
 0x3c0   : > { %1284 = vtanh.f32 %v828_v33 }
 0x3c1   : > { %1286 = vtanh.f32 %v826_v42 }
 0x3c2   : > { %1288 = vtanh.f32 %v821_v43 }
 0x3c3   : > { %1290 = vtanh.f32 %v823_v44 }
 0x3c4   : > { %1292 = vtanh.f32 %v816_v1 }
 0x3c5   : > { %845 = vperm.xlu1 %1226, %v1279_v35   ;;  %v1283_v48 = vpop.eup %1282  ;;  %1294 = vtanh.f32 %v818_v0 }
 0x3c6   : > { %v1285_v4 = vpop.eup %1284 }
 0x3c7   : > { %v1287_v53 = vpop.eup %1286 }
 0x3c8   : > { %v1289_v56 = vpop.eup %1288 }
 0x3c9   : > { %v1291_v58 = vpop.eup %1290 }
 0x3ca   : > { %v1293_v8 = vpop.eup %1292 }
 0x3cb   : > { %v1295_v63 = vpop.eup %1294 }
 0x3f7   : > { %v866_v13 = vpop.permute.xlu2 %865 }
 0x3f8   : > { %v887_v55 = vmul.f32 %v1287_v53, %v866_v13 }
 0x3ff   : > { %v851_v3 = vpop.permute.xlu2 %850 }
 0x400   : > { %v884_v10 = vmul.f32 %v1295_v63, %v851_v3 }
 0x407   : > { %v861_v12 = vpop.permute.xlu0 %860 }
 0x408   : > { %v886_v60 = vmul.f32 %v1291_v58, %v861_v12 }
 0x417   : > { %v871_v16 = vpop.permute.xlu1 %870 }
 0x418   : > { %v888_v51 = vmul.f32 %v1285_v4, %v871_v16 }
 0x41a   : > { %v893_v57 = vpack.c.bf16 %v888_v51, %v887_v55 }
 0x41f   : > { %v876_v40 = vpop.permute.xlu1 %875 }
 0x420   : > { %v889_v62 = vmul.f32 %v1281_v45, %v876_v40 }
 0x427   : > { %v881_v49 = vpop.permute.xlu1 %880 }
 0x428   : > { %v890_v50 = vmul.f32 %v1283_v48, %v881_v49 }
 0x42a   : > { %v894_v52 = vpack.c.bf16 %v890_v50, %v889_v62 }
 0x42c   : > { %899 = vmatpush.bf16.msrb.mxu1 %v894_v52 }
 0x42f   : > { %v856_v59 = vpop.permute.xlu1 %855 }
 0x430   : > { %v885_v2 = vmul.f32 %v1289_v56, %v856_v59  ;;  %900 = vmatpush.bf16.msrb.mxu1 %v893_v57 }
 0x432   : > { %v892_v61 = vpack.c.bf16 %v886_v60, %v885_v2 }
 0x434   : > { %901 = vmatpush.bf16.msrb.mxu1 %v892_v61 }
 0x437   : > { %v846_v19 = vpop.permute.xlu1 %845 }
 0x438   : > { %v883_v5 = vmul.f32 %v1293_v8, %v846_v19 }
 0x43a   : > { %v891_v6 = vpack.c.bf16 %v884_v10, %v883_v5 }
 0x43c   : > { %902 = vmatpush.bf16.msrb.mxu1 %v891_v6 }
 0x43f   : > { %1153 = vmatmul.msk.bf16.vlgmr.msrb.gmra.mxu1 %vm666_vm3, %v1648_v20 }
 0x44f   : > { %1154 = vmatmul.msk.bf16.gmra.mxu1 %vm666_vm3, %v1659_v22 }
 0x45f   : > { %1155 = vmatmul.msk.bf16.gmra.mxu1 %vm666_vm3, %v1650_v21 }
 0x4bc   : > { %v904_v14 = vpop.f32.mrf.mxu1 }
 0x4bd   : > { %v905_v29 = vadd.f32 %v904_v14, %v1687_v38 }
 0x4c4   : > { %v906_v15 = vpop.f32.mrf.mxu1 }
 0x4c5   : > { %v907_v20 = vadd.f32 %v906_v15, %v1680_v34 }
 0x4cc   : > { %v909_v47 = vpop.f32.mrf.mxu1 }
 0x4cd   : > { %v910_v18 = vadd.f32 %v909_v47, %v1675_v31 }
 0x4d4   : > { %v911_v26 = vpop.f32.mrf.mxu1 }
 0x4d5   : > { %v912_v17 = vadd.f32 %v911_v26, %v1677_v32 }
 0x4d7   : > { %1156 = vmatpush.xpose.msk.msrb.mxu3 %vm666_vm3, %v912_v17 }
 0x4db   : > { %1157 = vmatpush.xpose.msk.msrb.mxu3 %vm666_vm3, %v910_v18 }
 0x4dc   : > { %v914_v46 = vpop.f32.mrf.mxu1 }
 0x4dd   : > { %v915_v22 = vadd.f32 %v914_v46, %v1671_v24 }
 0x4df   : > { %1158 = vmatpush.xpose.msk.msrb.mxu3 %vm666_vm3, %v907_v20  ;;  %v918_v21 = vsel %vm699_vm4, %v915_v22, -inf }
 0x4e0   : > { %919 = vmax.xlane.f32.xlu1 %v918_v21 }
 0x4e3   : > { %1159 = vmatpush.xpose.msk.msrb.mxu3 %vm666_vm3, %v905_v29 }
 0x4e4   : > { %v916_v32 = vpop.f32.mrf.mxu1 }
 0x553   : > { %v920_v31 = vpop.xlane.xlu1 %919 }
 0x554   : > { %v921_v23 = vsub.f32 %v915_v22, %v920_v31 }
 0x556   : > { %v922_v25 = vmul.f32 1.442695, %v921_v23 }
 0x558   : > { %1296 = vpow2.f32 %v922_v25 }
 0x55e   : > { %v1297_v35 = vpop.eup %1296 }
 0x55f   : > { %v924_v34 = vsel %vm699_vm4, %v1297_v35, 0.0 }
 0x560   : > { %925 = vadd.xlane.f32.xlu2 %v924_v34 }
 0x5d3   : > { %v926_v24 = vpop.xlane.xlu2 %925 }
 0x5d4   : > { %1298 = vrcp.f32 %v926_v24 }
 0x5da   : > { %v1299_v27 = vpop.eup %1298 }
 0x5db   : > { %v928_v28 = vmul.f32 %v1299_v27, %v1297_v35 }
 0x5dd   : > { %1160 = vmatmul.msk.f32.vlgmr.msrb.gmra.mxu3 %vm666_vm3, %v928_v28 }
 0x660   : > { %v961_v38 = vpop.f32.mrf.mxu3 }
 0x661   : > { %v965_v30 = vrot.slane %v961_v38, 7 }
 0x663   : > { %v968_v7 = vsel %vm967_vm5, %v1703_v54, %v965_v30 }
 0x664   : > { %970 = vst.msk [vmem:[%s317_s9] sm:$0x3] %vm969_vm6, %v968_v7 }
 0x665   : > { %1327 = shalt.err (!%p1324_p3)
}
 0x666   : > { %1185 = dma.vmem_to_hbm [thread:$0]  (%p1445_p5), %s985_s10, 32, %s987_s12, %s972_s18  }
 0x667 PF: > { %p1191_p4 = scmp.ge.s32.totalorder %s1362_s30, 2  ;;  %s998_s22 = sand.u32 1, %s1350_s27  }
 0x668   : > { %s999_s25 = scalar_lea.sflag [#allocation3], %s998_s22 }
 0x669   : > { %p1188_p7 = pnand %p1191_p4, %p1449_p6 }
 0x66b   : > { %p1189_p8 = pneg %p1188_p7 }
 0x66d   : > { %1345 = dma.done.wait (%p1189_p8), %s999_s25, 32  }
 0x66e   : > { %1347 = vsyncadd (%p1189_p8), %s999_s25, 4294967264  ;;  %p18_p9 = scmp.ge.s32.totalorder %s1433_s11, 4   ;;  %s1783_s27 = smov %s1354_s28 }
 0x66f   : > { %s1784_s28 = smov %s1358_s29  ;;  %s1785_s29 = smov %s1443_s14 }
 0x670   : > { %s1786_s30 = smov %s1433_s11  ;;  %20 = sbr.rel (!%p18_p9) target bundleno = 3 (0x3), region = 92 }
 0x675   :  { %1005 = vsyncpa [#allocation3], 1 }
 0x676   :  { %1007 = vsyncpa [#allocation3 + $0x1], 1 }

</bundles_post_ra>
